<compile_context>
chip_gen: v7x
topology: tpu7x:2x2x1
jax: 0.10.0
libtpu: 0.0.40
codegen_flags: <defaults>
</compile_context>

<pallas_src>
import jax
import jax.numpy as jnp
from jax.experimental import pallas as pl
from jax.experimental.pallas import tpu as pltpu

# ---------------- config (small synthetic shapes consistent with the module) ----------
BATCH = 2
IMG_SHAPE = (4, 16, 16)      # (C_in, H, W)   (module default is (40, 50, 50))
CHANS = (4, 4)               # chans
KSIZES = (7, 5)              # stacked 3x3 convs: (K-1)//2 layers each
N_UNITS = 3
SEQ_LEN = 3                  # recur_seq_len
BN_EPS = 1e-3
NOISE_STD = 0.05             # GaussianNoise: identity in eval mode
MAX_CLAMP = 10.0
KINETICS_DT = 0.01
N_STATES = 4


def update_shape(shape, ksize):
    return (shape[0] - ksize + 1, shape[1] - ksize + 1)


SHAPE1 = update_shape(IMG_SHAPE[1:], KSIZES[0])     # spatial shape after bipolar conv (10,10)
SHAPE2 = update_shape(SHAPE1, KSIZES[1])            # spatial shape after amacrine conv (6,6)
HW1 = SHAPE1[0] * SHAPE1[1]                         # 100
HW2 = SHAPE2[0] * SHAPE2[1]                         # 36
K0 = KSIZES[0] * KSIZES[0] * IMG_SHAPE[0]           # 196  bipolar im2col depth
K1 = KSIZES[1] * KSIZES[1] * SEQ_LEN * CHANS[0]     # 300  amacrine im2col depth
N1 = CHANS[1] * HW2                                 # 144  amacrine feature count


# ----------------------------- Pallas kernels -----------------------------------------
def _vmem():
    return pl.BlockSpec(memory_space=pltpu.MemorySpace.VMEM)


def _softplus(x):
    # matches torch.nn.Softplus(beta=1, threshold=20)
    return jnp.where(x > 20.0, x, jnp.log1p(jnp.exp(jnp.minimum(x, 20.0))))


def _bipolar_kinetics_kernel(cols_ref, w_ref, scale_ref, shift_ref, pop_ref, rates_ref,
                             pop_out_ref):
    """One grid step = one batch element (lane-dense (C, HW) frames).

    cols:  (K0, HW1)            bf16   transposed im2col of the input image
    w:     (C0, K0)             bf16   composed 7x7 conv weight (transposed)
    scale: (C0, HW1)            f32    |gamma|/sqrt(var+eps)       (CHW feature order)
    shift: (C0, HW1)            f32    beta - mean*scale + scale*conv_bias
    pop:   (N_STATES, C0, HW1)  f32    kinetic state (R, A, I1, I2), aliased in place
    rates: (1, 8)               f32    [ka*dt/10, kfi*dt, kfr*dt, ksi*dt, ksr*dt, 0,0,0]
    """
    z = jnp.dot(w_ref[...], cols_ref[...], preferred_element_type=jnp.float32)  # (C0, HW1)
    y = _softplus(z * scale_ref[...] + shift_ref[...])
    y = jnp.clip(y, 0.0, MAX_CLAMP)                       # Clamp(0,10); x(1/10) folded into ka

    r = rates_ref[...]                                    # (1, 8)
    ka = r[0:1, 0:1] * y                                  # input-gated activation rate (C0,HW1)
    kfi = r[0:1, 1:2]
    kfr = r[0:1, 2:3]
    ksi = r[0:1, 3:4]
    ksr = r[0:1, 4:5]

    # TODO(synk): exact Kinetics source not provided; standard torchdeepretina 4-state
    # (R, A, I1, I2) forward-Euler kinetic update with input-gated activation rate,
    # simultaneous update (old values on the RHS).
    R, A, I1, I2 = pop_ref[0], pop_ref[1], pop_ref[2], pop_ref[3]
    pop_out_ref[0] = R + kfr * I1 - ka * R
    pop_out_ref[1] = A + ka * R - kfi * A
    pop_out_ref[2] = I1 + kfi * A + ksr * I2 - (kfr + ksi) * I1
    pop_out_ref[3] = I2 + ksi * I1 - ksr * I2


def _amacrine_ganglion_kernel(cols_ref, w_ref, scale_ref, shift_ref, gw_ref, gshift_ref,
                              o_ref):
    """Fused amacrine conv + BN + ReLU and ganglion Linear + BN + Softplus (gridless).

    cols:   (K1, B*HW2)       bf16   transposed im2col of the seq-concatenated frames
    w:      (C1, K1)          bf16   composed 5x5 conv weight (transposed)
    scale:  (C1, HW2)         f32    amacrine BN scale (per (c,hw) feature; batch-free)
    shift:  (C1, HW2)         f32    amacrine BN/bias shift
    gw:     (N_UNITS, C1, HW2) f32   ganglion weight with |gamma|/sqrt(var+eps) folded in
    gshift: (1, N_UNITS)      f32    ganglion BN shift
    o:      (B, N_UNITS)      f32
    """
    z = jnp.dot(w_ref[...], cols_ref[...], preferred_element_type=jnp.float32)  # (C1, B*HW2)
    scale = scale_ref[...]
    shift = shift_ref[...]
    gw = gw_ref[...]                                         # (N_UNITS, C1, HW2)

    rows = []
    for b in range(BATCH):                                   # static, tiny
        act_b = jnp.maximum(z[:, b * HW2:(b + 1) * HW2] * scale + shift, 0.0)   # (C1, HW2)
        vals = []
        for u in range(N_UNITS):                             # static, tiny
            p = jnp.sum(act_b * gw[u], axis=1, keepdims=True)    # (C1, 1)
            vals.append(jnp.sum(p, axis=0, keepdims=True))       # (1, 1)
        rows.append(jnp.concatenate(vals, axis=1))           # (1, N_UNITS)
    lin = jnp.concatenate(rows, axis=0)                      # (B, N_UNITS)
    o_ref[...] = _softplus(lin + gshift_ref[...])


# ----------------------------- Pallas call wrappers ------------------------------------
def _pallas_bipolar_kinetics(cols, w, scale, shift, pop, rates):
    B = pop.shape[0]
    return pl.pallas_call(
        _bipolar_kinetics_kernel,
        out_shape=jax.ShapeDtypeStruct(pop.shape, jnp.float32),
        grid=(B,),
        in_specs=[
            pl.BlockSpec((None, K0, HW1), lambda b: (b, 0, 0)),
            pl.BlockSpec((CHANS[0], K0), lambda b: (0, 0)),
            pl.BlockSpec((CHANS[0], HW1), lambda b: (0, 0)),          # batch-independent
            pl.BlockSpec((CHANS[0], HW1), lambda b: (0, 0)),          # batch-independent
            pl.BlockSpec((None, N_STATES, CHANS[0], HW1), lambda b: (b, 0, 0, 0)),
            pl.BlockSpec((1, 8), lambda b: (0, 0)),
        ],
        out_specs=pl.BlockSpec((None, N_STATES, CHANS[0], HW1), lambda b: (b, 0, 0, 0)),
        input_output_aliases={4: 0},      # update the kinetic state buffer in place
        compiler_params=pltpu.CompilerParams(
            dimension_semantics=("parallel",)),               # v7x: both TensorCores
    )(cols, w, scale, shift, pop, rates)


def _pallas_amacrine_ganglion(cols, w, scale, shift, gw3, gshift):
    # Tiny at these shapes -> single gridless launch.  At production shapes this would
    # get a ("parallel",) grid over batch and per-batch blocks, sized for v7x's 64 MiB VMEM.
    return pl.pallas_call(
        _amacrine_ganglion_kernel,
        out_shape=jax.ShapeDtypeStruct((BATCH, N_UNITS), jnp.float32),
        in_specs=[_vmem()] * 6,
        out_specs=_vmem(),
    )(cols, w, scale, shift, gw3, gshift)


# ----------------------------- conv glue ------------------------------------------------
def _im2col_t(x_nchw, k, hw_out):
    """Valid KxK im2col, transposed: (B, k*k*C, Ho*Wo), rows ordered (dy, dx, c)."""
    B, C = x_nchw.shape[0], x_nchw.shape[1]
    Ho, Wo = x_nchw.shape[2] - k + 1, x_nchw.shape[3] - k + 1
    taps = [x_nchw[:, :, dy:dy + Ho, dx:dx + Wo].reshape(B, C, hw_out)
            for dy in range(k) for dx in range(k)]
    return jnp.concatenate(taps, axis=1)                     # (B, k*k*C, Ho*Wo)


def _compose_stacked_weights(ws):
    """Compose a stack of valid 3x3 cross-correlations (no intermediate nonlinearity)
    into one effective KxK kernel (HWIO): W[d] = sum_{a+b=d} W1[a] @ W2[b] over channels."""
    w = ws[0]
    for w2 in ws[1:]:
        ka, kb = w.shape[0], w2.shape[0]
        K = ka + kb - 1
        acc = jnp.zeros((K, K, w.shape[2], w2.shape[3]), jnp.float32)
        for by in range(kb):
            for bx in range(kb):
                acc = acc.at[by:by + ka, bx:bx + ka, :, :].add(
                    jnp.einsum('yxim,mo->yxio', w, w2[by, bx]))
        w = acc
    return w


# ----------------------------- parameter setup ------------------------------------------
def init_params(key):
    ks = jax.random.split(key, 10)

    def nrm(k, shape, s=0.1):
        return s * jax.random.normal(k, shape, jnp.float32)

    n_bip = (KSIZES[0] - 1) // 2     # 3 stacked 3x3 convs
    n_ama = (KSIZES[1] - 1) // 2     # 2 stacked 3x3 convs

    def stacked(k, cin, cout, n):
        kw = jax.random.split(k, n)
        ws, ci = [], cin
        for i in range(n):
            ws.append(nrm(kw[i], (3, 3, ci, cout)))          # HWIO
            ci = cout
        return ws

    def bn(k, n):
        k1, k2, k3, k4 = jax.random.split(k, 4)
        return (1.0 + nrm(k1, (n,)),                         # gamma
                nrm(k2, (n,)),                               # beta
                nrm(k3, (n,)),                               # running mean
                1.0 + 0.5 * jax.random.uniform(k4, (n,), jnp.float32))  # running var

    return dict(
        bip_conv_w=stacked(ks[0], IMG_SHAPE[0], CHANS[0], n_bip),
        bip_conv_b=nrm(ks[1], (CHANS[0],)),       # only the last conv of the stack is biased
        bip_bn=bn(ks[2], CHANS[0] * HW1),
        kinetics_raw=0.5 + jax.random.uniform(ks[3], (5,), jnp.float32),  # ka,kfi,kfr,ksi,ksr
        ama_conv_w=stacked(ks[4], SEQ_LEN * CHANS[0], CHANS[1], n_ama),
        ama_conv_b=nrm(ks[5], (CHANS[1],)),
        ama_bn=bn(ks[6], N1),
        gang_w=nrm(ks[7], (N_UNITS, N1), float(N1) ** -0.5),  # torch Linear (out,in); no bias
        gang_bn=bn(ks[8], N_UNITS),
    )


def prepare_params(params):
    """One-time preprocessing: compose stacked conv weights, fold conv bias + AbsBN(eval)
    into per-feature (C, HW) affines (torch's CHW feature order), fold the ganglion BN
    gamma into its weight, fold dt / |.| / (1/MAX_CLAMP) into the kinetic rates, and cast
    MXU operands to bf16 (transposed so the GEMMs are (C,K)x(K,HW))."""
    w_bip = _compose_stacked_weights(params['bip_conv_w'])    # (7,7,Cin,C0) HWIO
    w_ama = _compose_stacked_weights(params['ama_conv_w'])    # (5,5,SEQ*C0,C1) HWIO

    def fold(bn, bias, c, hw):
        gamma, beta, mean, var = bn
        s = jnp.abs(gamma) / jnp.sqrt(var + BN_EPS)           # per (c,hw) feature, CHW order
        sh = beta - mean * s
        s = s.reshape(c, hw)
        sh = sh.reshape(c, hw) + s * bias[:, None]            # fold conv bias into shift
        return s, sh

    bip_scale, bip_shift = fold(params['bip_bn'], params['bip_conv_b'], CHANS[0], HW1)
    ama_scale, ama_shift = fold(params['ama_bn'], params['ama_conv_b'], CHANS[1], HW2)

    g_gamma, g_beta, g_mean, g_var = params['gang_bn']
    g_scale = jnp.abs(g_gamma) / jnp.sqrt(g_var + BN_EPS)     # (n_units,)
    g_shift = (g_beta - g_mean * g_scale).reshape(1, N_UNITS)
    gw3 = g_scale[:, None, None] * params['gang_w'].reshape(N_UNITS, CHANS[1], HW2)

    rates = KINETICS_DT * jnp.abs(params['kinetics_raw'])     # dt * |rate|
    rates = rates.at[0].multiply(1.0 / MAX_CLAMP)             # fold Multiply(1/10) into ka
    rates8 = jnp.zeros((1, 8), jnp.float32).at[0, :5].set(rates)

    return dict(
        bip_w=w_bip.reshape(-1, CHANS[0]).T.astype(jnp.bfloat16),   # (C0, K0)
        bip_scale=bip_scale, bip_shift=bip_shift,                   # (C0, HW1) f32
        ama_w=w_ama.reshape(-1, CHANS[1]).T.astype(jnp.bfloat16),   # (C1, K1)
        ama_scale=ama_scale, ama_shift=ama_shift,                   # (C1, HW2) f32
        gang_w3=gw3.astype(jnp.float32),                            # (n_units, C1, HW2)
        gang_shift=g_shift,                                         # (1, n_units)
        kin_rates=rates8,                                           # (1, 8) f32
    )


# ----------------------------- full forward pass ----------------------------------------
def kinetics_model_forward(prep, x, hs):
    """x: (B, C, H, W) float32 NCHW.
       hs = [h0, h1]:
         h0: kinetic state populations (B, n_states=4, C0, HW1) — a free reshape of
             torch's (B, 4, C0*H1*W1) CHW layout; lane axis = HW1.
         h1: list (deque, oldest first) of SEQ_LEN past activations, each (B, C0, HW1)."""
    pop, frames = hs
    B = x.shape[0]

    # ---- bipolar conv + AbsBN + Softplus + Clamp + (1/10) + kinetics: ONE fused kernel ----
    # GaussianNoise(std) and dropout(p=0) are identities in eval mode.
    cols = _im2col_t(x.astype(jnp.bfloat16), KSIZES[0], HW1)         # (B, K0, HW1)
    pop_new = _pallas_bipolar_kinetics(cols, prep['bip_w'], prep['bip_scale'],
                                       prep['bip_shift'], pop, prep['kin_rates'])
    fx = pop_new[:, 1]                                               # new active state A

    # ---- deque append-right / drop-oldest; concat order oldest->newest (== torch.cat) ----
    frames_new = list(frames[1:]) + [fx]

    # ---- amacrine + ganglion: ONE fused kernel.  Channel-concat of frames matches torch's
    #      reshape to (B, seq*C0, H1, W1); im2col stays in XLA at these tiny shapes. ----
    stacked = jnp.concatenate(
        [f.reshape(B, CHANS[0], SHAPE1[0], SHAPE1[1]) for f in frames_new], axis=1)
    acols = _im2col_t(stacked, KSIZES[1], HW2)                       # (B, K1, HW2) f32
    acolsT = jnp.transpose(acols, (1, 0, 2)).reshape(K1, B * HW2).astype(jnp.bfloat16)
    out = _pallas_amacrine_ganglion(acolsT, prep['ama_w'], prep['ama_scale'],
                                    prep['ama_shift'], prep['gang_w3'], prep['gang_shift'])

    # scale_kinet=False -> no ScaleShift; inference_exp=False -> no final exp
    return out, [pop_new, frames_new]


if __name__ == "__main__":
    key = jax.random.PRNGKey(0)
    kp, kx, kh1 = jax.random.split(key, 3)
    params = init_params(kp)
    prep = prepare_params(params)

    x = jax.random.normal(kx, (BATCH,) + IMG_SHAPE, jnp.float32)
    # h0: kinetic state (B, 4, C0, HW1): start fully in the resting state R.
    h0 = jnp.zeros((BATCH, N_STATES, CHANS[0], HW1), jnp.float32).at[:, 0].set(1.0)
    # h1: deque (oldest first) of past SEQ_LEN activated populations, each (B, C0, HW1).
    h1 = [0.1 * jax.random.uniform(k, (BATCH, CHANS[0], HW1), jnp.float32)
          for k in jax.random.split(kh1, SEQ_LEN)]

    fwd = jax.jit(kinetics_model_forward)
    out, (h0_new, h1_new) = fwd(prep, x, [h0, h1])
    # second recurrent step to exercise state threading
    out2, (h0_2, h1_2) = fwd(prep, x, [h0_new, h1_new])
    jax.block_until_ready(out)
    jax.block_until_ready(out2)
    jax.block_until_ready(h0_2)

    assert out.shape == (BATCH, N_UNITS)
    assert h0_new.shape == (BATCH, N_STATES, CHANS[0], HW1)
    assert len(h1_new) == SEQ_LEN and h1_new[-1].shape == (BATCH, CHANS[0], HW1)
    print("KERNEL_OK")
</pallas_src>

<mosaic_0001>
module attributes {stable_mosaic.version = 11 : i64} {
  func.func @_bipolar_kinetics_kernel(%arg0: i32, %arg1: memref<1x196x100xbf16, #tpu.memory_space<vmem>>, %arg2: memref<4x196xbf16, #tpu.memory_space<vmem>>, %arg3: memref<4x100xf32, #tpu.memory_space<vmem>>, %arg4: memref<4x100xf32, #tpu.memory_space<vmem>>, %arg5: memref<1x4x4x100xf32, #tpu.memory_space<vmem>>, %arg6: memref<1x8xf32, #tpu.memory_space<vmem>>, %arg7: memref<1x4x4x100xf32, #tpu.memory_space<vmem>>) attributes {dimension_semantics = [#tpu.dimension_semantics<parallel>], iteration_bounds = array<i64: 2>, scalar_prefetch = 0 : i64, scratch_operands = 0 : i64, tpu.core_type = #tpu.core_type<tc>, window_params = [{transform_indices = @transform_0, window_bounds = array<i64: 1, 196, 100>}, {pipeline_mode = #tpu.pipeline_mode<synchronous>, transform_indices = @transform_1, window_bounds = array<i64: 4, 196>}, {pipeline_mode = #tpu.pipeline_mode<synchronous>, transform_indices = @transform_2, window_bounds = array<i64: 4, 100>}, {pipeline_mode = #tpu.pipeline_mode<synchronous>, transform_indices = @transform_3, window_bounds = array<i64: 4, 100>}, {transform_indices = @transform_4, window_bounds = array<i64: 1, 4, 4, 100>}, {pipeline_mode = #tpu.pipeline_mode<synchronous>, transform_indices = @transform_5, window_bounds = array<i64: 1, 8>}, {transform_indices = @transform_6, window_bounds = array<i64: 1, 4, 4, 100>}]} {
    %c0 = arith.constant 0 : index
    %c0_0 = arith.constant 0 : index
    %0 = vector.load %arg2[%c0, %c0_0] : memref<4x196xbf16, #tpu.memory_space<vmem>>, vector<4x196xbf16>
    %c0_1 = arith.constant 0 : index
    %c0_2 = arith.constant 0 : index
    %c0_3 = arith.constant 0 : index
    %1 = vector.load %arg1[%c0_1, %c0_2, %c0_3] : memref<1x196x100xbf16, #tpu.memory_space<vmem>>, vector<1x196x100xbf16>
    %2 = vector.shape_cast %1 : vector<1x196x100xbf16> to vector<196x100xbf16>
    %cst = arith.constant dense<0.000000e+00> : vector<4x100xf32>
    %3 = tpu.matmul %0, %2, %cst {dimension_numbers = #tpu.dot_dimension_numbers<[1], [0], [0], [1], [0, 0, 1, 1], [], []>} : vector<4x196xbf16>, vector<196x100xbf16>, vector<4x100xf32> -> vector<4x100xf32>
    %c0_4 = arith.constant 0 : index
    %c0_5 = arith.constant 0 : index
    %4 = vector.load %arg3[%c0_4, %c0_5] : memref<4x100xf32, #tpu.memory_space<vmem>>, vector<4x100xf32>
    %5 = arith.mulf %3, %4 : vector<4x100xf32>
    %c0_6 = arith.constant 0 : index
    %c0_7 = arith.constant 0 : index
    %6 = vector.load %arg4[%c0_6, %c0_7] : memref<4x100xf32, #tpu.memory_space<vmem>>, vector<4x100xf32>
    %7 = arith.addf %5, %6 : vector<4x100xf32>
    %cst_8 = arith.constant 2.000000e+01 : f32
    %8 = vector.broadcast %cst_8 : f32 to vector<4x100xf32>
    %9 = arith.cmpf ogt, %7, %8 : vector<4x100xf32>
    %cst_9 = arith.constant 2.000000e+01 : f32
    %10 = vector.broadcast %cst_9 : f32 to vector<4x100xf32>
    %11 = arith.minimumf %7, %10 : vector<4x100xf32>
    %12 = math.exp %11 : vector<4x100xf32>
    %13 = math.log1p %12 : vector<4x100xf32>
    %14 = arith.select %9, %7, %13 : vector<4x100xi1>, vector<4x100xf32>
    %cst_10 = arith.constant 0.000000e+00 : f32
    %cst_11 = arith.constant 1.000000e+01 : f32
    %15 = vector.broadcast %cst_10 : f32 to vector<4x100xf32>
    %16 = arith.maximumf %15, %14 : vector<4x100xf32>
    %17 = vector.broadcast %cst_11 : f32 to vector<4x100xf32>
    %18 = arith.minimumf %17, %16 : vector<4x100xf32>
    %c0_12 = arith.constant 0 : index
    %c0_13 = arith.constant 0 : index
    %19 = vector.load %arg6[%c0_12, %c0_13] : memref<1x8xf32, #tpu.memory_space<vmem>>, vector<1x8xf32>
    %20 = vector.extract_strided_slice %19 {offsets = [0, 0], sizes = [1, 1], strides = [1, 1]} : vector<1x8xf32> to vector<1x1xf32>
    %21 = vector.broadcast %20 : vector<1x1xf32> to vector<4x100xf32>
    %22 = arith.mulf %21, %18 : vector<4x100xf32>
    %23 = vector.extract_strided_slice %19 {offsets = [0, 1], sizes = [1, 1], strides = [1, 1]} : vector<1x8xf32> to vector<1x1xf32>
    %24 = vector.extract_strided_slice %19 {offsets = [0, 2], sizes = [1, 1], strides = [1, 1]} : vector<1x8xf32> to vector<1x1xf32>
    %25 = vector.extract_strided_slice %19 {offsets = [0, 3], sizes = [1, 1], strides = [1, 1]} : vector<1x8xf32> to vector<1x1xf32>
    %26 = vector.extract_strided_slice %19 {offsets = [0, 4], sizes = [1, 1], strides = [1, 1]} : vector<1x8xf32> to vector<1x1xf32>
    %c0_14 = arith.constant 0 : index
    %c0_15 = arith.constant 0 : index
    %c0_16 = arith.constant 0 : index
    %c0_17 = arith.constant 0 : index
    %27 = vector.load %arg5[%c0_14, %c0_15, %c0_16, %c0_17] : memref<1x4x4x100xf32, #tpu.memory_space<vmem>>, vector<1x1x4x100xf32>
    %28 = vector.shape_cast %27 : vector<1x1x4x100xf32> to vector<4x100xf32>
    %c0_18 = arith.constant 0 : index
    %c1 = arith.constant 1 : index
    %c0_19 = arith.constant 0 : index
    %c0_20 = arith.constant 0 : index
    %29 = vector.load %arg5[%c0_18, %c1, %c0_19, %c0_20] : memref<1x4x4x100xf32, #tpu.memory_space<vmem>>, vector<1x1x4x100xf32>
    %30 = vector.shape_cast %29 : vector<1x1x4x100xf32> to vector<4x100xf32>
    %c0_21 = arith.constant 0 : index
    %c2 = arith.constant 2 : index
    %c0_22 = arith.constant 0 : index
    %c0_23 = arith.constant 0 : index
    %31 = vector.load %arg5[%c0_21, %c2, %c0_22, %c0_23] : memref<1x4x4x100xf32, #tpu.memory_space<vmem>>, vector<1x1x4x100xf32>
    %32 = vector.shape_cast %31 : vector<1x1x4x100xf32> to vector<4x100xf32>
    %c0_24 = arith.constant 0 : index
    %c3 = arith.constant 3 : index
    %c0_25 = arith.constant 0 : index
    %c0_26 = arith.constant 0 : index
    %33 = vector.load %arg5[%c0_24, %c3, %c0_25, %c0_26] : memref<1x4x4x100xf32, #tpu.memory_space<vmem>>, vector<1x1x4x100xf32>
    %34 = vector.shape_cast %33 : vector<1x1x4x100xf32> to vector<4x100xf32>
    %35 = vector.broadcast %24 : vector<1x1xf32> to vector<4x100xf32>
    %36 = arith.mulf %35, %32 : vector<4x100xf32>
    %37 = arith.addf %28, %36 : vector<4x100xf32>
    %38 = arith.mulf %22, %28 : vector<4x100xf32>
    %39 = arith.subf %37, %38 : vector<4x100xf32>
    %c0_27 = arith.constant 0 : index
    %c0_28 = arith.constant 0 : index
    %c0_29 = arith.constant 0 : index
    %c0_30 = arith.constant 0 : index
    %40 = vector.load %arg7[%c0_27, %c0_28, %c0_29, %c0_30] : memref<1x4x4x100xf32, #tpu.memory_space<vmem>>, vector<1x1x4x100xf32>
    %41 = vector.shape_cast %40 : vector<1x1x4x100xf32> to vector<4x100xf32>
    %42 = vector.shape_cast %39 : vector<4x100xf32> to vector<1x1x4x100xf32>
    tpu.vector_store %arg7[%c0_27, %c0_28, %c0_29, %c0_30], %42 {strides = array<i32>} : memref<1x4x4x100xf32, #tpu.memory_space<vmem>>, vector<1x1x4x100xf32>,
    %43 = arith.mulf %22, %28 : vector<4x100xf32>
    %44 = arith.addf %30, %43 : vector<4x100xf32>
    %45 = vector.broadcast %23 : vector<1x1xf32> to vector<4x100xf32>
    %46 = arith.mulf %45, %30 : vector<4x100xf32>
    %47 = arith.subf %44, %46 : vector<4x100xf32>
    %c0_31 = arith.constant 0 : index
    %c1_32 = arith.constant 1 : index
    %c0_33 = arith.constant 0 : index
    %c0_34 = arith.constant 0 : index
    %48 = vector.load %arg7[%c0_31, %c1_32, %c0_33, %c0_34] : memref<1x4x4x100xf32, #tpu.memory_space<vmem>>, vector<1x1x4x100xf32>
    %49 = vector.shape_cast %48 : vector<1x1x4x100xf32> to vector<4x100xf32>
    %50 = vector.shape_cast %47 : vector<4x100xf32> to vector<1x1x4x100xf32>
    tpu.vector_store %arg7[%c0_31, %c1_32, %c0_33, %c0_34], %50 {strides = array<i32>} : memref<1x4x4x100xf32, #tpu.memory_space<vmem>>, vector<1x1x4x100xf32>,
    %51 = vector.broadcast %23 : vector<1x1xf32> to vector<4x100xf32>
    %52 = arith.mulf %51, %30 : vector<4x100xf32>
    %53 = arith.addf %32, %52 : vector<4x100xf32>
    %54 = vector.broadcast %26 : vector<1x1xf32> to vector<4x100xf32>
    %55 = arith.mulf %54, %34 : vector<4x100xf32>
    %56 = arith.addf %53, %55 : vector<4x100xf32>
    %57 = arith.addf %24, %25 : vector<1x1xf32>
    %58 = vector.broadcast %57 : vector<1x1xf32> to vector<4x100xf32>
    %59 = arith.mulf %58, %32 : vector<4x100xf32>
    %60 = arith.subf %56, %59 : vector<4x100xf32>
    %c0_35 = arith.constant 0 : index
    %c2_36 = arith.constant 2 : index
    %c0_37 = arith.constant 0 : index
    %c0_38 = arith.constant 0 : index
    %61 = vector.load %arg7[%c0_35, %c2_36, %c0_37, %c0_38] : memref<1x4x4x100xf32, #tpu.memory_space<vmem>>, vector<1x1x4x100xf32>
    %62 = vector.shape_cast %61 : vector<1x1x4x100xf32> to vector<4x100xf32>
    %63 = vector.shape_cast %60 : vector<4x100xf32> to vector<1x1x4x100xf32>
    tpu.vector_store %arg7[%c0_35, %c2_36, %c0_37, %c0_38], %63 {strides = array<i32>} : memref<1x4x4x100xf32, #tpu.memory_space<vmem>>, vector<1x1x4x100xf32>,
    %64 = vector.broadcast %25 : vector<1x1xf32> to vector<4x100xf32>
    %65 = arith.mulf %64, %32 : vector<4x100xf32>
    %66 = arith.addf %34, %65 : vector<4x100xf32>
    %67 = vector.broadcast %26 : vector<1x1xf32> to vector<4x100xf32>
    %68 = arith.mulf %67, %34 : vector<4x100xf32>
    %69 = arith.subf %66, %68 : vector<4x100xf32>
    %c0_39 = arith.constant 0 : index
    %c3_40 = arith.constant 3 : index
    %c0_41 = arith.constant 0 : index
    %c0_42 = arith.constant 0 : index
    %70 = vector.load %arg7[%c0_39, %c3_40, %c0_41, %c0_42] : memref<1x4x4x100xf32, #tpu.memory_space<vmem>>, vector<1x1x4x100xf32>
    %71 = vector.shape_cast %70 : vector<1x1x4x100xf32> to vector<4x100xf32>
    %72 = vector.shape_cast %69 : vector<4x100xf32> to vector<1x1x4x100xf32>
    tpu.vector_store %arg7[%c0_39, %c3_40, %c0_41, %c0_42], %72 {strides = array<i32>} : memref<1x4x4x100xf32, #tpu.memory_space<vmem>>, vector<1x1x4x100xf32>,
    return
  }
  func.func @transform_0(%arg0: i32) -> (i32, i32, i32) {
    %c0_i32 = arith.constant 0 : i32
    %c0_i32_0 = arith.constant 0 : i32
    %c0_i32_1 = arith.constant 0 : i32
    return %arg0, %c0_i32, %c0_i32_0 : i32, i32, i32
  }
  func.func @transform_1(%arg0: i32) -> (i32, i32) {
    %c0_i32 = arith.constant 0 : i32
    %c0_i32_0 = arith.constant 0 : i32
    %c0_i32_1 = arith.constant 0 : i32
    return %c0_i32, %c0_i32_0 : i32, i32
  }
  func.func @transform_2(%arg0: i32) -> (i32, i32) {
    %c0_i32 = arith.constant 0 : i32
    %c0_i32_0 = arith.constant 0 : i32
    %c0_i32_1 = arith.constant 0 : i32
    return %c0_i32, %c0_i32_0 : i32, i32
  }
  func.func @transform_3(%arg0: i32) -> (i32, i32) {
    %c0_i32 = arith.constant 0 : i32
    %c0_i32_0 = arith.constant 0 : i32
    %c0_i32_1 = arith.constant 0 : i32
    return %c0_i32, %c0_i32_0 : i32, i32
  }
  func.func @transform_4(%arg0: i32) -> (i32, i32, i32, i32) {
    %c0_i32 = arith.constant 0 : i32
    %c0_i32_0 = arith.constant 0 : i32
    %c0_i32_1 = arith.constant 0 : i32
    %c0_i32_2 = arith.constant 0 : i32
    return %arg0, %c0_i32, %c0_i32_0, %c0_i32_1 : i32, i32, i32, i32
  }
  func.func @transform_5(%arg0: i32) -> (i32, i32) {
    %c0_i32 = arith.constant 0 : i32
    %c0_i32_0 = arith.constant 0 : i32
    %c0_i32_1 = arith.constant 0 : i32
    return %c0_i32, %c0_i32_0 : i32, i32
  }
  func.func @transform_6(%arg0: i32) -> (i32, i32, i32, i32) {
    %c0_i32 = arith.constant 0 : i32
    %c0_i32_0 = arith.constant 0 : i32
    %c0_i32_1 = arith.constant 0 : i32
    %c0_i32_2 = arith.constant 0 : i32
    return %arg0, %c0_i32, %c0_i32_0, %c0_i32_1 : i32, i32, i32, i32
  }
}

module attributes {stable_mosaic.version = 11 : i64} {
  func.func @_amacrine_ganglion_kernel(%arg0: memref<300x72xbf16, #tpu.memory_space<vmem>>, %arg1: memref<4x300xbf16, #tpu.memory_space<vmem>>, %arg2: memref<4x36xf32, #tpu.memory_space<vmem>>, %arg3: memref<4x36xf32, #tpu.memory_space<vmem>>, %arg4: memref<3x4x36xf32, #tpu.memory_space<vmem>>, %arg5: memref<1x3xf32, #tpu.memory_space<vmem>>, %arg6: memref<2x3xf32, #tpu.memory_space<vmem>>) attributes {dimension_semantics = [], scalar_prefetch = 0 : i64, scratch_operands = 0 : i64, tpu.core_type = #tpu.core_type<tc>} {
    %c0 = arith.constant 0 : index
    %c0_0 = arith.constant 0 : index
    %0 = vector.load %arg1[%c0, %c0_0] : memref<4x300xbf16, #tpu.memory_space<vmem>>, vector<4x300xbf16>
    %c0_1 = arith.constant 0 : index
    %c0_2 = arith.constant 0 : index
    %1 = vector.load %arg0[%c0_1, %c0_2] : memref<300x72xbf16, #tpu.memory_space<vmem>>, vector<300x72xbf16>
    %cst = arith.constant dense<0.000000e+00> : vector<4x72xf32>
    %2 = tpu.matmul %0, %1, %cst {dimension_numbers = #tpu.dot_dimension_numbers<[1], [0], [0], [1], [0, 0, 1, 1], [], []>} : vector<4x300xbf16>, vector<300x72xbf16>, vector<4x72xf32> -> vector<4x72xf32>
    %c0_3 = arith.constant 0 : index
    %c0_4 = arith.constant 0 : index
    %3 = vector.load %arg2[%c0_3, %c0_4] : memref<4x36xf32, #tpu.memory_space<vmem>>, vector<4x36xf32>
    %c0_5 = arith.constant 0 : index
    %c0_6 = arith.constant 0 : index
    %4 = vector.load %arg3[%c0_5, %c0_6] : memref<4x36xf32, #tpu.memory_space<vmem>>, vector<4x36xf32>
    %c0_7 = arith.constant 0 : index
    %c0_8 = arith.constant 0 : index
    %c0_9 = arith.constant 0 : index
    %5 = vector.load %arg4[%c0_7, %c0_8, %c0_9] : memref<3x4x36xf32, #tpu.memory_space<vmem>>, vector<3x4x36xf32>
    %6 = vector.extract_strided_slice %2 {offsets = [0, 0], sizes = [4, 36], strides = [1, 1]} : vector<4x72xf32> to vector<4x36xf32>
    %7 = arith.mulf %6, %3 : vector<4x36xf32>
    %8 = arith.addf %7, %4 : vector<4x36xf32>
    %cst_10 = arith.constant 0.000000e+00 : f32
    %9 = vector.broadcast %cst_10 : f32 to vector<4x36xf32>
    %10 = arith.maximumf %8, %9 : vector<4x36xf32>
    %11 = vector.extract_strided_slice %5 {offsets = [0, 0, 0], sizes = [1, 4, 36], strides = [1, 1, 1]} : vector<3x4x36xf32> to vector<1x4x36xf32>
    %12 = vector.shape_cast %11 : vector<1x4x36xf32> to vector<4x36xf32>
    %13 = arith.mulf %10, %12 : vector<4x36xf32>
    %cst_11 = arith.constant dense<0.000000e+00> : vector<4xf32>
    %14 = vector.multi_reduction <add>, %13, %cst_11 [1] : vector<4x36xf32> to vector<4xf32>
    %15 = vector.shape_cast %14 : vector<4xf32> to vector<4x1xf32>
    %cst_12 = arith.constant dense<0.000000e+00> : vector<1xf32>
    %16 = vector.multi_reduction <add>, %15, %cst_12 [0] : vector<4x1xf32> to vector<1xf32>
    %17 = vector.shape_cast %16 : vector<1xf32> to vector<1x1xf32>
    %18 = vector.extract_strided_slice %5 {offsets = [1, 0, 0], sizes = [1, 4, 36], strides = [1, 1, 1]} : vector<3x4x36xf32> to vector<1x4x36xf32>
    %19 = vector.shape_cast %18 : vector<1x4x36xf32> to vector<4x36xf32>
    %20 = arith.mulf %10, %19 : vector<4x36xf32>
    %cst_13 = arith.constant dense<0.000000e+00> : vector<4xf32>
    %21 = vector.multi_reduction <add>, %20, %cst_13 [1] : vector<4x36xf32> to vector<4xf32>
    %22 = vector.shape_cast %21 : vector<4xf32> to vector<4x1xf32>
    %cst_14 = arith.constant dense<0.000000e+00> : vector<1xf32>
    %23 = vector.multi_reduction <add>, %22, %cst_14 [0] : vector<4x1xf32> to vector<1xf32>
    %24 = vector.shape_cast %23 : vector<1xf32> to vector<1x1xf32>
    %25 = vector.extract_strided_slice %5 {offsets = [2, 0, 0], sizes = [1, 4, 36], strides = [1, 1, 1]} : vector<3x4x36xf32> to vector<1x4x36xf32>
    %26 = vector.shape_cast %25 : vector<1x4x36xf32> to vector<4x36xf32>
    %27 = arith.mulf %10, %26 : vector<4x36xf32>
    %cst_15 = arith.constant dense<0.000000e+00> : vector<4xf32>
    %28 = vector.multi_reduction <add>, %27, %cst_15 [1] : vector<4x36xf32> to vector<4xf32>
    %29 = vector.shape_cast %28 : vector<4xf32> to vector<4x1xf32>
    %cst_16 = arith.constant dense<0.000000e+00> : vector<1xf32>
    %30 = vector.multi_reduction <add>, %29, %cst_16 [0] : vector<4x1xf32> to vector<1xf32>
    %31 = vector.shape_cast %30 : vector<1xf32> to vector<1x1xf32>
    %32 = tpu.concatenate %17, %24, %31 in 1 : vector<1x1xf32>, vector<1x1xf32>, vector<1x1xf32> -> vector<1x3xf32>
    %33 = vector.extract_strided_slice %2 {offsets = [0, 36], sizes = [4, 36], strides = [1, 1]} : vector<4x72xf32> to vector<4x36xf32>
    %34 = arith.mulf %33, %3 : vector<4x36xf32>
    %35 = arith.addf %34, %4 : vector<4x36xf32>
    %cst_17 = arith.constant 0.000000e+00 : f32
    %36 = vector.broadcast %cst_17 : f32 to vector<4x36xf32>
    %37 = arith.maximumf %35, %36 : vector<4x36xf32>
    %38 = vector.extract_strided_slice %5 {offsets = [0, 0, 0], sizes = [1, 4, 36], strides = [1, 1, 1]} : vector<3x4x36xf32> to vector<1x4x36xf32>
    %39 = vector.shape_cast %38 : vector<1x4x36xf32> to vector<4x36xf32>
    %40 = arith.mulf %37, %39 : vector<4x36xf32>
    %cst_18 = arith.constant dense<0.000000e+00> : vector<4xf32>
    %41 = vector.multi_reduction <add>, %40, %cst_18 [1] : vector<4x36xf32> to vector<4xf32>
    %42 = vector.shape_cast %41 : vector<4xf32> to vector<4x1xf32>
    %cst_19 = arith.constant dense<0.000000e+00> : vector<1xf32>
    %43 = vector.multi_reduction <add>, %42, %cst_19 [0] : vector<4x1xf32> to vector<1xf32>
    %44 = vector.shape_cast %43 : vector<1xf32> to vector<1x1xf32>
    %45 = vector.extract_strided_slice %5 {offsets = [1, 0, 0], sizes = [1, 4, 36], strides = [1, 1, 1]} : vector<3x4x36xf32> to vector<1x4x36xf32>
    %46 = vector.shape_cast %45 : vector<1x4x36xf32> to vector<4x36xf32>
    %47 = arith.mulf %37, %46 : vector<4x36xf32>
    %cst_20 = arith.constant dense<0.000000e+00> : vector<4xf32>
    %48 = vector.multi_reduction <add>, %47, %cst_20 [1] : vector<4x36xf32> to vector<4xf32>
    %49 = vector.shape_cast %48 : vector<4xf32> to vector<4x1xf32>
    %cst_21 = arith.constant dense<0.000000e+00> : vector<1xf32>
    %50 = vector.multi_reduction <add>, %49, %cst_21 [0] : vector<4x1xf32> to vector<1xf32>
    %51 = vector.shape_cast %50 : vector<1xf32> to vector<1x1xf32>
    %52 = vector.extract_strided_slice %5 {offsets = [2, 0, 0], sizes = [1, 4, 36], strides = [1, 1, 1]} : vector<3x4x36xf32> to vector<1x4x36xf32>
    %53 = vector.shape_cast %52 : vector<1x4x36xf32> to vector<4x36xf32>
    %54 = arith.mulf %37, %53 : vector<4x36xf32>
    %cst_22 = arith.constant dense<0.000000e+00> : vector<4xf32>
    %55 = vector.multi_reduction <add>, %54, %cst_22 [1] : vector<4x36xf32> to vector<4xf32>
    %56 = vector.shape_cast %55 : vector<4xf32> to vector<4x1xf32>
    %cst_23 = arith.constant dense<0.000000e+00> : vector<1xf32>
    %57 = vector.multi_reduction <add>, %56, %cst_23 [0] : vector<4x1xf32> to vector<1xf32>
    %58 = vector.shape_cast %57 : vector<1xf32> to vector<1x1xf32>
    %59 = tpu.concatenate %44, %51, %58 in 1 : vector<1x1xf32>, vector<1x1xf32>, vector<1x1xf32> -> vector<1x3xf32>
    %60 = tpu.concatenate %32, %59 in 0 : vector<1x3xf32>, vector<1x3xf32> -> vector<2x3xf32>
    %c0_24 = arith.constant 0 : index
    %c0_25 = arith.constant 0 : index
    %61 = vector.load %arg5[%c0_24, %c0_25] : memref<1x3xf32, #tpu.memory_space<vmem>>, vector<1x3xf32>
    %62 = vector.broadcast %61 : vector<1x3xf32> to vector<2x3xf32>
    %63 = arith.addf %60, %62 : vector<2x3xf32>
    %cst_26 = arith.constant 2.000000e+01 : f32
    %64 = vector.broadcast %cst_26 : f32 to vector<2x3xf32>
    %65 = arith.cmpf ogt, %63, %64 : vector<2x3xf32>
    %cst_27 = arith.constant 2.000000e+01 : f32
    %66 = vector.broadcast %cst_27 : f32 to vector<2x3xf32>
    %67 = arith.minimumf %63, %66 : vector<2x3xf32>
    %68 = math.exp %67 : vector<2x3xf32>
    %69 = math.log1p %68 : vector<2x3xf32>
    %70 = arith.select %65, %63, %69 : vector<2x3xi1>, vector<2x3xf32>
    %c0_28 = arith.constant 0 : index
    %c0_29 = arith.constant 0 : index
    %71 = vector.load %arg6[%c0_28, %c0_29] : memref<2x3xf32, #tpu.memory_space<vmem>>, vector<2x3xf32>
    tpu.vector_store %arg6[%c0_28, %c0_29], %70 {strides = array<i32>} : memref<2x3xf32, #tpu.memory_space<vmem>>, vector<2x3xf32>,
    return
  }
}

</mosaic_0001>

<bundles_post_ra>
// kernel: squeeze.3
= control target key start
LH: loop header
LB: loop body
LE: loop exit
PB: predicated region body
PF: predicated region fallthrough
CT: control target
= control target key end

     0   :  { %vm34_vm0 = vcmask 80896   ;;  %s351_s8 = smov 98   ;;  %s352_s9 = smov 108   ;;  %s436_s0 = inlined_call_operand.vmem [shape: bf16[2,1,4,100], index: 0, kind: input, shape index: {}]   ;;  %s437_s1 = inlined_call_operand.vmem [shape: bf16[2,4,10,10], index: 1, kind: output, shape index: {}]  }
   0x1   :  { %v278_v0 = vld [vmem:[%s436_s0] sm:$0xf]   ;;  %s350_s0 = smov 118   ;;  %s353_s10 = smov 88  }
   0x2   :  { %v16_v1 = vunpack.c.l.bf16 %v278_v0  ;;  %s354_s11 = smov 78   ;;  %s355_s12 = smov 68  }
   0x3   :  { %s356_s13 = smov 58   ;;  %s357_s14 = smov 48  }
   0x4   :  { %19 = vst [vmem:[#allocation1] ss:$8 sps:$4 sm:$0xff] %v16_v1   ;;  %s358_s15 = smov 38  }
   0xb   :  { %v44_v2 = vld.sshfl [vmem:[#allocation1] sm:$0xff pattern:$0xba983210]  }
   0xc   :  { %v33_v3 = vld [vmem:[#allocation1] sm:$0xf]   ;;  %45 = vrot.lane.b32.xlu0 %v44_v2, %s350_s0  ;;  %69 = vrot.lane.b32.xlu1 %v44_v2, %s351_s8  ;;  %v38_v4 = vld [vmem:[#allocation1 + $0x8] sm:$0xf]  }
   0xd   :  { %35 = vst.msk [vmem:[#allocation0] ss:$16 sm:$0x3] %vm34_vm0, %v33_v3   ;;  %36 = vst.msk [vmem:[#allocation0] ss:$16 sm:$0xc] %vm34_vm0, %v33_v3  }
   0xe   :  { %41 = vst.msk [vmem:[#allocation0 + $0x40] ss:$16 sm:$0x3] %vm34_vm0, %v38_v4   ;;  %43 = vst.msk [vmem:[#allocation0 + $0x40] ss:$16 sm:$0xc] %vm34_vm0, %v38_v4  }
  0x10   :  { %57 = vrot.lane.b32.xlu0 %v44_v2, %s352_s9  ;;  %81 = vrot.lane.b32.xlu1 %v44_v2, %s353_s10 }
  0x14   :  { %93 = vrot.lane.b32.xlu0 %v44_v2, %s354_s11  ;;  %105 = vrot.lane.b32.xlu1 %v44_v2, %s355_s12 }
  0x18   :  { %117 = vrot.lane.b32.xlu0 %v44_v2, %s356_s13  ;;  %129 = vrot.lane.b32.xlu1 %v44_v2, %s357_s14 }
  0x1c   :  { %141 = vrot.lane.b32.xlu0 %v44_v2, %s358_s15 }
  0x7e   :  { %v46_v5 = vpop.permute.xlu0 %45   ;;  %v70_v6 = vpop.permute.xlu1 %69  }
  0x7f   :  { %49 = vst.msk [vmem:[#allocation0 + $0x1] ss:$16 sm:$0x3] %vm34_vm0, %v46_v5   ;;  %51 = vst.msk [vmem:[#allocation0 + $0x1] ss:$16 sm:$0xc] %vm34_vm0, %v46_v5  }
  0x80   :  { %53 = vst.msk [vmem:[#allocation0 + $0x1] ss:$16 sm:$0x30] %vm34_vm0, %v46_v5   ;;  %55 = vst.msk [vmem:[#allocation0 + $0x1] ss:$16 sm:$0xc0] %vm34_vm0, %v46_v5  }
  0x81   :  { %73 = vst.msk [vmem:[#allocation0 + $0x3] ss:$16 sm:$0x3] %vm34_vm0, %v70_v6   ;;  %75 = vst.msk [vmem:[#allocation0 + $0x3] ss:$16 sm:$0xc] %vm34_vm0, %v70_v6  }
  0x82   :  { %77 = vst.msk [vmem:[#allocation0 + $0x3] ss:$16 sm:$0x30] %vm34_vm0, %v70_v6   ;;  %79 = vst.msk [vmem:[#allocation0 + $0x3] ss:$16 sm:$0xc0] %vm34_vm0, %v70_v6   ;;  %v58_v7 = vpop.permute.xlu0 %57   ;;  %v82_v8 = vpop.permute.xlu1 %81  }
  0x83   :  { %61 = vst.msk [vmem:[#allocation0 + $0x2] ss:$16 sm:$0x3] %vm34_vm0, %v58_v7   ;;  %63 = vst.msk [vmem:[#allocation0 + $0x2] ss:$16 sm:$0xc] %vm34_vm0, %v58_v7  }
  0x84   :  { %65 = vst.msk [vmem:[#allocation0 + $0x2] ss:$16 sm:$0x30] %vm34_vm0, %v58_v7   ;;  %67 = vst.msk [vmem:[#allocation0 + $0x2] ss:$16 sm:$0xc0] %vm34_vm0, %v58_v7  }
  0x85   :  { %85 = vst.msk [vmem:[#allocation0 + $0x4] ss:$16 sm:$0x3] %vm34_vm0, %v82_v8   ;;  %87 = vst.msk [vmem:[#allocation0 + $0x4] ss:$16 sm:$0xc] %vm34_vm0, %v82_v8  }
  0x86   :  { %89 = vst.msk [vmem:[#allocation0 + $0x4] ss:$16 sm:$0x30] %vm34_vm0, %v82_v8   ;;  %91 = vst.msk [vmem:[#allocation0 + $0x4] ss:$16 sm:$0xc0] %vm34_vm0, %v82_v8   ;;  %v94_v9 = vpop.permute.xlu0 %93   ;;  %v106_v10 = vpop.permute.xlu1 %105  }
  0x87   :  { %97 = vst.msk [vmem:[#allocation0 + $0x5] ss:$16 sm:$0x3] %vm34_vm0, %v94_v9   ;;  %99 = vst.msk [vmem:[#allocation0 + $0x5] ss:$16 sm:$0xc] %vm34_vm0, %v94_v9  }
  0x88   :  { %101 = vst.msk [vmem:[#allocation0 + $0x5] ss:$16 sm:$0x30] %vm34_vm0, %v94_v9   ;;  %103 = vst.msk [vmem:[#allocation0 + $0x5] ss:$16 sm:$0xc0] %vm34_vm0, %v94_v9  }
  0x89   :  { %109 = vst.msk [vmem:[#allocation0 + $0x6] ss:$16 sm:$0x3] %vm34_vm0, %v106_v10   ;;  %111 = vst.msk [vmem:[#allocation0 + $0x6] ss:$16 sm:$0xc] %vm34_vm0, %v106_v10  }
  0x8a   :  { %113 = vst.msk [vmem:[#allocation0 + $0x6] ss:$16 sm:$0x30] %vm34_vm0, %v106_v10   ;;  %115 = vst.msk [vmem:[#allocation0 + $0x6] ss:$16 sm:$0xc0] %vm34_vm0, %v106_v10   ;;  %v118_v11 = vpop.permute.xlu0 %117   ;;  %v130_v12 = vpop.permute.xlu1 %129  }
  0x8b   :  { %121 = vst.msk [vmem:[#allocation0 + $0x7] ss:$16 sm:$0x3] %vm34_vm0, %v118_v11   ;;  %123 = vst.msk [vmem:[#allocation0 + $0x7] ss:$16 sm:$0xc] %vm34_vm0, %v118_v11  }
  0x8c   :  { %125 = vst.msk [vmem:[#allocation0 + $0x7] ss:$16 sm:$0x30] %vm34_vm0, %v118_v11   ;;  %127 = vst.msk [vmem:[#allocation0 + $0x7] ss:$16 sm:$0xc0] %vm34_vm0, %v118_v11  }
  0x8d   :  { %133 = vst.msk [vmem:[#allocation0 + $0x8] ss:$16 sm:$0x3] %vm34_vm0, %v130_v12   ;;  %135 = vst.msk [vmem:[#allocation0 + $0x8] ss:$16 sm:$0xc] %vm34_vm0, %v130_v12  }
  0x8e   :  { %137 = vst.msk [vmem:[#allocation0 + $0x8] ss:$16 sm:$0x30] %vm34_vm0, %v130_v12   ;;  %139 = vst.msk [vmem:[#allocation0 + $0x8] ss:$16 sm:$0xc0] %vm34_vm0, %v130_v12   ;;  %v142_v13 = vpop.permute.xlu0 %141  }
  0x8f   :  { %145 = vst.msk [vmem:[#allocation0 + $0x9] ss:$16 sm:$0x3] %vm34_vm0, %v142_v13   ;;  %147 = vst.msk [vmem:[#allocation0 + $0x9] ss:$16 sm:$0xc] %vm34_vm0, %v142_v13  }
  0x90   :  { %149 = vst.msk [vmem:[#allocation0 + $0x9] ss:$16 sm:$0x30] %vm34_vm0, %v142_v13   ;;  %151 = vst.msk [vmem:[#allocation0 + $0x9] ss:$16 sm:$0xc0] %vm34_vm0, %v142_v13  }
  0x92   :  { %v156_v14 = vld [vmem:[#allocation0] sm:$0xff]  ;;  %v167_v15 = vld [vmem:[#allocation0 + $0x10] sm:$0xff] }
  0x93   :  { %v181_v16 = vld [vmem:[#allocation0 + $0x20] sm:$0xff]  ;;  %v195_v17 = vld [vmem:[#allocation0 + $0x30] sm:$0xff] }
  0x94   :  { %v237_v18 = vld [vmem:[#allocation0 + $0x60] sm:$0xff]  ;;  %v251_v19 = vld [vmem:[#allocation0 + $0x70] sm:$0xff] }
  0x95   :  { %v209_v20 = vld [vmem:[#allocation0 + $0x40] sm:$0xff]  ;;  %v223_v30 = vld [vmem:[#allocation0 + $0x50] sm:$0xff] }
  0x96   :  { %v161_v23 = vld [vmem:[#allocation0 + $0x8] sm:$0xff]  ;;  %v174_v27 = vld [vmem:[#allocation0 + $0x18] sm:$0xff] }
  0x97   :  { %v244_v21 = vld [vmem:[#allocation0 + $0x68] sm:$0xff]  ;;  %v258_v22 = vld [vmem:[#allocation0 + $0x78] sm:$0xff]  ;;  %v297_v26 = vpack.c.bf16 %v161_v23, %v156_v14  ;;  %v302_v31 = vpack.c.bf16 %v174_v27, %v167_v15 }
  0x98   :  { %v327_v24 = vpack.c.bf16 %v244_v21, %v237_v18  ;;  %v332_v25 = vpack.c.bf16 %v258_v22, %v251_v19  ;;  %v188_v28 = vld [vmem:[#allocation0 + $0x28] sm:$0xff]  ;;  %v202_v29 = vld [vmem:[#allocation0 + $0x38] sm:$0xff] }
  0x99   :  { %v307_v32 = vpack.c.bf16 %v188_v28, %v181_v16  ;;  %v312_v33 = vpack.c.bf16 %v202_v29, %v195_v17  ;;  %v216_v34 = vld [vmem:[#allocation0 + $0x48] sm:$0xff]  ;;  %v230_v35 = vld [vmem:[#allocation0 + $0x58] sm:$0xff]  ;;  %298 = vst [vmem:[%s437_s1] sm:$0xff] %v297_v26   ;;  %334 = vst [vmem:[%s437_s1 + $0x8] sm:$0xff] %v302_v31  }
  0x9a   :  { %339 = vst [vmem:[%s437_s1 + $0x30] sm:$0xff] %v327_v24   ;;  %340 = vst [vmem:[%s437_s1 + $0x38] sm:$0xff] %v332_v25   ;;  %v317_v36 = vpack.c.bf16 %v216_v34, %v209_v20  ;;  %v322_v37 = vpack.c.bf16 %v230_v35, %v223_v30 }
  0x9b   :  { %335 = vst [vmem:[%s437_s1 + $0x10] sm:$0xff] %v307_v32   ;;  %336 = vst [vmem:[%s437_s1 + $0x18] sm:$0xff] %v312_v33  }
  0x9c   :  { %337 = vst [vmem:[%s437_s1 + $0x20] sm:$0xff] %v317_v36   ;;  %338 = vst [vmem:[%s437_s1 + $0x28] sm:$0xff] %v322_v37  }

// kernel: kinetics_model_forward.2
= control target key start
LH: loop header
LB: loop body
LE: loop exit
PB: predicated region body
PF: predicated region fallthrough
CT: control target
= control target key end

     0   :  { %s711_s21 = smov 0   ;;  %s799_s0 = inlined_call_operand.vmem [shape: bf16[2,196,100], index: 0, kind: input, shape index: {}]   ;;  %s800_s1 = inlined_call_operand.vmem [shape: bf16[4,196], index: 1, kind: input, shape index: {}]   ;;  %s801_s2 = inlined_call_operand.vmem [shape: f32[4,100], index: 2, kind: input, shape index: {}]   ;;  %s802_s3 = inlined_call_operand.vmem [shape: f32[4,100], index: 3, kind: input, shape index: {}]   ;;  %s803_s4 = inlined_call_operand.vmem [shape: f32[2,4,4,100], index: 4, kind: input, shape index: {}, may-alias: {4,6}]   ;;  %s804_s5 = inlined_call_operand.vmem [shape: f32[1,8], index: 5, kind: input, shape index: {}]   ;;  %s805_s6 = inlined_call_operand.vmem [shape: f32[2,4,4,100], index: 6, kind: output, shape index: {}, may-alias: {4,6}]  }
   0x1 LB: > { %s589_s22 = sadd.s32 4294967295, %s668_s21   ;;  %p593_p0 = scmp.ge.s32.totalorder %s668_s21, 1  ;;  %s668_s21 = sphi %s711_s21, %s16_s21  }
   0x2   : > { %p222_p1 = scmp.lt.s32.totalorder %s668_s21, 3 }
   0x4   : > { %p223_p2 = pnand %p593_p0, %p222_p1 }
   0x5   : > { %p257_p3 = scmp.lt.s32.totalorder (!%p223_p2), %s589_s22, 1  ;;  %v722_v0 = vld [vmem:[%s804_s5] sm:$0x1] (!%p223_p2)  ;;  %v454_v1 = vlaneseq (!%p223_p2)  ;;  %v670_v2 = vmov (!%p223_p2), 0   ;;  %s671_s25 = smov (!%p223_p2), 127   ;;  %vm384_vm0 = vcmask (!%p223_p2), 556032  }
   0x6   : > { %226 = sbr.rel (%p223_p2) target bundleno = 330 (0x14a), region = 44  ;;  %392 = vmatprep.subr.bf16.mxu0 (!%p223_p2), %v670_v2  ;;  %496 = vrot.lane.b32.xlu0 (!%p223_p2), %v722_v0, %s671_s25  ;;  %v729_v3 = vld.sshfl [vmem:[%s800_s1] sm:$0x33 pattern:$0x76325410] (!%p223_p2)  ;;  %v672_v6 = vmov (!%p223_p2), 1  }
   0x7   : > { %v733_v4 = vshrl.u32 (!%p223_p2), %v454_v1, 7  ;;  %v307_v5 = vcombine.high (!%p223_p2), %v729_v3, %v729_v3  ;;  %640 = vset.pattern.permute.xlu1 (!%p223_p2), %v672_v6  ;;  %639 = vset.pattern.permute.xlu0 (!%p223_p2), %v670_v2  ;;  %v673_v11 = vmov (!%p223_p2), 2   ;;  %v674_v12 = vmov (!%p223_p2), 3   ;;  %v432_v48 = vld [vmem:[%s801_s2] sm:$0xf] (!%p223_p2) }
   0x8   : > { %v675_v15 = vmov (!%p223_p2), 4   ;;  %vm388_vm1 = vcmask (!%p223_p2), 1041408   ;;  %vm478_vm2 = vcmask (!%p223_p2), 814080   ;;  %v434_v50 = vld [vmem:[%s802_s3] sm:$0xf] (!%p223_p2) }
   0x9   : > { %v456_v7 = vsub.s32 (!%p223_p2), 0, %v733_v4  ;;  %613 = vmatprep.mubr.msk.bf16.mxu0 (!%p223_p2), %vm384_vm0, %v307_v5 }
   0xb   : > { %v457_v8 = vrot.slane (!%p223_p2), %v722_v0, %v456_v7 }
   0xd   : > { %s807_s22 = smov (!%p257_p3, %s589_s22), 1  ;;  %482 = vperm.xlu1 %640, %v457_v8   ;;  %459 = vperm.xlu0 %639, %v457_v8  }
   0xe   : > { %s624_s28 = smul.u32 100, %s807_s22  ;;  %s622_s8 = sshll.u32 %s807_s22, 4 }
   0xf   : > { %s266_s11 = scalar_lea.vmem %s803_s4, %s622_s8  ;;  %s780_s14 = scalar_lea.vmem %s805_s6, %s622_s8 }
  0x10   : > { %s743_s7 = scalar_lea.vmem %s799_s0, %s624_s28  ;;  %v615_v32 = vld [vmem:[%s266_s11 + $0x8] sm:$0xf]  ;;  %v616_v33 = vld [vmem:[%s266_s11 + $0xc] sm:$0xf]  ;;  %v614_v40 = vld [vmem:[%s266_s11 + $0x4] sm:$0xf] }
  0x11   : > { %v645_v9 = vld [vmem:[%s743_s7] sm:$0xff]   ;;  %v646_v10 = vld [vmem:[%s743_s7 + $0x8] sm:$0xff]   ;;  %641 = vset.pattern.permute.xlu1 %v673_v11  ;;  %643 = vset.pattern.permute.xlu0 %v674_v12  ;;  %v647_v13 = vld [vmem:[%s743_s7 + $0x10] sm:$0xff]  }
  0x12   : > { %393 = vmatpush1.bf16.msra.mxu0 %v645_v9  ;;  %471 = vperm.xlu1 %641, %v457_v8   ;;  %v648_v14 = vld [vmem:[%s743_s7 + $0x18] sm:$0xff]   ;;  %v649_v16 = vld [vmem:[%s743_s7 + $0x20] sm:$0xff]   ;;  %v650_v17 = vld [vmem:[%s743_s7 + $0x28] sm:$0xff]  }
  0x13   : > { %394 = vmatprep.subr.bf16.mxu0 %v670_v2  ;;  %514 = vperm.xlu0 %643, %v457_v8   ;;  %v651_v18 = vld [vmem:[%s743_s7 + $0x30] sm:$0xff]   ;;  %v652_v19 = vld [vmem:[%s743_s7 + $0x38] sm:$0xff]   ;;  %v653_v20 = vld [vmem:[%s743_s7 + $0x40] sm:$0xff]  }
  0x14   : > { %v654_v21 = vld [vmem:[%s743_s7 + $0x48] sm:$0xff]   ;;  %v655_v22 = vld [vmem:[%s743_s7 + $0x50] sm:$0xff]   ;;  %v656_v23 = vld [vmem:[%s743_s7 + $0x58] sm:$0xff]  }
  0x15   : > { %v657_v24 = vld [vmem:[%s743_s7 + $0x60] ss:$0 sps:$4 sm:$0x33]  }
  0x16   : > { %395 = vmatpush1.bf16.msra.mxu0 %v646_v10  ;;  %642 = vset.pattern.permute.xlu1 %v675_v15  ;;  %v390_v25 = vsel %vm388_vm1, %v657_v24, 0  ;;  %v463_v41 = vld [vmem:[%s266_s11] sm:$0xf] }
  0x17   : > { %396 = vmatprep.subr.bf16.mxu0 %v670_v2  ;;  %491 = vperm.xlu1 %642, %v457_v8  }
  0x1a   : > { %397 = vmatpush1.bf16.msra.mxu0 %v647_v13 }
  0x1b   : > { %398 = vmatprep.subr.bf16.mxu0 %v670_v2  ;;  %644 = vset.pattern.permute.xlu1 %v673_v11 }
  0x1e   : > { %399 = vmatpush1.bf16.msra.mxu0 %v648_v14 }
  0x1f   : > { %400 = vmatprep.subr.bf16.mxu0 %v670_v2 }
  0x22   : > { %401 = vmatpush1.bf16.msra.mxu0 %v649_v16 }
  0x23   : > { %402 = vmatprep.subr.bf16.mxu0 %v670_v2 }
  0x26   : > { %403 = vmatpush1.bf16.msra.mxu0 %v650_v17 }
  0x27   : > { %404 = vmatprep.subr.bf16.mxu0 %v670_v2 }
  0x2a   : > { %405 = vmatpush1.bf16.msra.mxu0 %v651_v18 }
  0x2b   : > { %406 = vmatprep.subr.bf16.mxu0 %v670_v2 }
  0x2e   : > { %407 = vmatpush1.bf16.msra.mxu0 %v652_v19 }
  0x2f   : > { %408 = vmatprep.subr.bf16.mxu0 %v670_v2 }
  0x32   : > { %409 = vmatpush1.bf16.msra.mxu0 %v653_v20 }
  0x33   : > { %410 = vmatprep.subr.bf16.mxu0 %v670_v2 }
  0x36   : > { %411 = vmatpush1.bf16.msra.mxu0 %v654_v21 }
  0x37   : > { %412 = vmatprep.subr.bf16.mxu0 %v670_v2 }
  0x3a   : > { %413 = vmatpush1.bf16.msra.mxu0 %v655_v22 }
  0x3b   : > { %414 = vmatprep.subr.bf16.mxu0 %v670_v2 }
  0x3e   : > { %415 = vmatpush1.bf16.msra.mxu0 %v656_v23 }
  0x3f   : > { %416 = vmatprep.subr.bf16.mxu0 %v670_v2 }
  0x42   : > { %417 = vmatpush1.bf16.msra.mxu0 %v390_v25 }
  0x45   : > { %425 = vmatmul.mubr.bf16.vlgmr.msra.gmra.mrb[0].mxu0 %v729_v3 }
  0x78   : > { %v497_v26 = vpop.permute.xlu0 %496 }
  0x79   : > { %v499_v27 = vadd.f32 %v497_v26, %v722_v0 }
  0x7b   : > { %v504_v28 = vrot.slane %v499_v27, %v456_v7 }
  0x7d   : > { %506 = vperm.xlu1 %644, %v504_v28  }
  0x8c   : > { %v483_v29 = vpop.permute.xlu1 %482  ;;  %v460_v30 = vpop.permute.xlu0 %459 }
  0x8d   : > { %v485_v42 = vmul.f32 %v614_v40, %v483_v29 }
  0x8f   : > { %v489_v43 = vadd.f32 %v615_v32, %v485_v42 }
  0x91   : > { %v472_v31 = vpop.permute.xlu1 %471 }
  0x92   : > { %v515_v34 = vpop.permute.xlu0 %514  ;;  %v474_v5 = vmul.f32 %v615_v32, %v472_v31 }
  0x93   : > { %v517_v35 = vmul.f32 %v615_v32, %v515_v34 }
  0x94   : > { %v475_v8 = vadd.f32 %v474_v5, %v463_v41 }
  0x95   : > { %v518_v38 = vadd.f32 %v616_v33, %v517_v35 }
  0x96   : > { %v492_v36 = vpop.permute.xlu1 %491 }
  0x97   : > { %v494_v37 = vmul.f32 %v616_v33, %v492_v36 }
  0x99   : > { %v519_v39 = vsub.f32 %v518_v38, %v494_v37  ;;  %v495_v44 = vadd.f32 %v494_v37, %v489_v43 }
  0x9b   : > { %619 = vst.msk [vmem:[%s780_s14 + $0xc] sm:$0xf] %vm478_vm2, %v519_v39 }
  0xfc   : > { %v507_v45 = vpop.permute.xlu1 %506 }
  0xfd   : > { %v509_v46 = vmul.f32 %v615_v32, %v507_v45 }
  0xff   : > { %v510_v47 = vsub.f32 %v495_v44, %v509_v46 }
 0x101   : > { %618 = vst.msk [vmem:[%s780_s14 + $0x8] sm:$0xf] %vm478_vm2, %v510_v47 }
 0x118   : > { %v426_v49 = vpop.f32.mrb[0].mxu0 }
 0x119   : > { %v433_v51 = vmul.f32 %v432_v48, %v426_v49  ;;  %v428_v52 = vpop.f32.mrb[1].mxu0 }
 0x11a   : > { %v429_v53 = vpop.f32.mrb[2].mxu0 }
 0x11b   : > { %v435_v54 = vadd.f32 %v434_v50, %v433_v51  ;;  %v430_v55 = vpop.f32.mrb[3].mxu0 }
 0x11d   : > { %v437_v56 = vmin.f32 %v435_v54, 20.0  ;;  %vm436_vm4 = vcmp.gt.f32.partialorder %v435_v54, 20.0 }
 0x11f   : > { %v438_v57 = vmul.f32 1.442695, %v437_v56 }
 0x121   : > { %658 = vpow2.f32 %v438_v57 }
 0x12b   : > { %v659_v58 = vpop.eup %658 }
 0x12c   : > { %v440_v59 = vadd.f32 1.0, %v659_v58  ;;  %v443_v60 = vmul.f32 -0.5, %v659_v58  ;;  %v446_v62 = vand.u32 2147483647, %v659_v58 }
 0x12e   : > { %660 = vlog2.f32 %v440_v59  ;;  %v444_v61 = vadd.f32 1.0, %v443_v60  ;;  %vm447_vm3 = vcmp.lt.f32.partialorder %v446_v62, 0.0004427343 }
 0x130   : > { %v445_v1 = vmul.f32 %v659_v58, %v444_v61 }
 0x138   : > { %v661_v63 = vpop.eup %660 }
 0x139   : > { %v442_v0 = vmul.f32 0.6931472, %v661_v63 }
 0x13b   : > { %v448_v2 = vsel %vm447_vm3, %v445_v1, %v442_v0 }
 0x13c   : > { %v449_v3 = vsel %vm436_vm4, %v435_v54, %v448_v2 }
 0x13d   : > { %v450_v4 = vmax.f32 %v449_v3, 0.0 }
 0x13f   : > { %v451_v6 = vmin.f32 %v450_v4, 10.0 }
 0x141   : > { %v462_v7 = vmul.f32 %v460_v30, %v451_v6 }
 0x143   : > { %v476_v9 = vmul.f32 %v463_v41, %v462_v7 }
 0x145   : > { %v477_v10 = vsub.f32 %v475_v8, %v476_v9  ;;  %v480_v11 = vadd.f32 %v614_v40, %v476_v9 }
 0x147   : > { %479 = vst.msk [vmem:[%s780_s14] sm:$0xf] %vm478_vm2, %v477_v10  ;;  %v486_v12 = vsub.f32 %v480_v11, %v485_v42 }
 0x149   : > { %617 = vst.msk [vmem:[%s780_s14 + $0x4] sm:$0xf] %vm478_vm2, %v486_v12 }
 0x14a PF: > { %s16_s21 = sadd.s32 1, %s668_s21  }
 0x14b   : > { %p13_p4 = scmp.ge.s32.totalorder %s16_s21, 4  }
 0x14d   :  { %15 = sbr.rel (!%p13_p4) target bundleno = 1 (0x1), region = 83 }

// kernel: kinetics_model_forward.3
= control target key start
LH: loop header
LB: loop body
LE: loop exit
PB: predicated region body
PF: predicated region fallthrough
CT: control target
= control target key end

     0   :  { %v555_v2 = vmov 0.0   ;;  %vm556_vm0 = vmmov 0   ;;  %vm200_vm1 = vcmask 1045504   ;;  %v69_v14 = vlaneseq  ;;  %s558_s9 = smov 36   ;;  %s698_s0 = inlined_call_operand.vmem [shape: bf16[300,72], index: 0, kind: input, shape index: {}]   ;;  %s699_s1 = inlined_call_operand.vmem [shape: bf16[4,300], index: 1, kind: input, shape index: {}]   ;;  %s700_s2 = inlined_call_operand.vmem [shape: f32[4,36], index: 2, kind: input, shape index: {}]   ;;  %s701_s3 = inlined_call_operand.vmem [shape: f32[4,36], index: 3, kind: input, shape index: {}]   ;;  %s702_s4 = inlined_call_operand.vmem [shape: f32[3,4,36], index: 4, kind: input, shape index: {}]   ;;  %s703_s5 = inlined_call_operand.vmem [shape: f32[1,3], index: 5, kind: input, shape index: {}]   ;;  %s704_s6 = inlined_call_operand.hbm [shape: f32[2,3], index: 6, kind: output, shape index: {}]  }
   0x1   :  { %v507_v0 = vld [vmem:[%s698_s0 + $0x40] sm:$0xff]   ;;  %491 = vmatprep.subr.bf16.mxu1 %v555_v2  ;;  %v509_v3 = vld [vmem:[%s698_s0 + $0x48] sm:$0xff]   ;;  %v511_v5 = vld [vmem:[%s698_s0 + $0x50] sm:$0xff]   ;;  %497 = vmatprep.mubr.msk.bf16.mxu1 %vm556_vm0, %v555_v2  ;;  %v557_v21 = vmov 1983009808  }
   0x2   :  { %v508_v1 = vld [vmem:[%s698_s0] sm:$0xff]   ;;  %465 = vmatprep.subr.bf16.mxu0 %v507_v0  ;;  %v510_v4 = vld [vmem:[%s698_s0 + $0x8] sm:$0xff]   ;;  %v512_v6 = vld [vmem:[%s698_s0 + $0x10] sm:$0xff]   ;;  %v67_v22 = vunpack.c.l.s4 %v557_v21  ;;  %v70_v23 = vshrl.u32 %v69_v14, 7 }
   0x3   :  { %466 = vmatpush3.bf16.msra.mxu0 %v508_v1  ;;  %v513_v7 = vld [vmem:[%s698_s0 + $0x58] sm:$0xff]   ;;  %v515_v9 = vld [vmem:[%s698_s0 + $0x60] sm:$0xff]   ;;  %v522_v12 = vld [vmem:[%s698_s0 + $0x88] sm:$0xff]  }
   0x4   :  { %467 = vmatprep.subr.bf16.mxu0 %v509_v3  ;;  %v514_v8 = vld [vmem:[%s698_s0 + $0x18] sm:$0xff]   ;;  %v519_v10 = vld [vmem:[%s698_s0 + $0x80] sm:$0xff]   ;;  %v517_v13 = vld [vmem:[%s698_s0 + $0x68] sm:$0xff]  }
   0x5   :  { %v516_v11 = vld [vmem:[%s698_s0 + $0x20] sm:$0xff]   ;;  %492 = vmatpush3.bf16.msra.mxu1 %v519_v10  ;;  %v518_v15 = vld [vmem:[%s698_s0 + $0x28] sm:$0xff]   ;;  %v525_v16 = vld [vmem:[%s698_s0 + $0x90] sm:$0x3f]  }
   0x6   :  { %493 = vmatprep.subr.bf16.mxu1 %v555_v2  ;;  %v25_v17 = vld [vmem:[%s699_s1] sm:$0x3f]  ;;  %v520_v19 = vld [vmem:[%s698_s0 + $0x70] sm:$0xff]   ;;  %v202_v20 = vsel %vm200_vm1, %v525_v16, 0 }
   0x7   :  { %468 = vmatpush3.bf16.msra.mxu0 %v510_v4  ;;  %v284_v18 = vld [vmem:[%s700_s2] sm:$0xf] }
   0x8   :  { %469 = vmatprep.subr.bf16.mxu0 %v511_v5  ;;  %332 = vrot.lane.b32.xlu0 %v284_v18, %s558_s9  ;;  %v286_v24 = vld [vmem:[%s702_s4] sm:$0xf] }
   0x9   :  { %494 = vmatpush3.bf16.msra.mxu1 %v522_v12  ;;  %343 = vrot.lane.b32.xlu1 %v286_v24, %s558_s9  ;;  %v285_v25 = vld [vmem:[%s701_s3] sm:$0xf] }
   0xa   :  { %495 = vmatprep.subr.bf16.mxu1 %v555_v2 }
   0xb   :  { %470 = vmatpush3.bf16.msra.mxu0 %v512_v6 }
   0xc   :  { %471 = vmatprep.subr.bf16.mxu0 %v513_v7 }
   0xf   :  { %472 = vmatpush3.bf16.msra.mxu0 %v514_v8 }
  0x10   :  { %473 = vmatprep.subr.bf16.mxu0 %v515_v9 }
  0x13   :  { %474 = vmatpush3.bf16.msra.mxu0 %v516_v11 }
  0x14   :  { %475 = vmatprep.subr.bf16.mxu0 %v517_v13 }
  0x15   :  { %11 = vsyncpa [#allocation3], 0  ;;  %496 = vmatpush3.bf16.msra.mxu1 %v202_v20  ;;  %v65_v26 = vcombine.high %v25_v17, %v25_v17  ;;  %v68_v27 = vunpack.c.0.s8 %v67_v22  ;;  %v287_v28 = vld [vmem:[%s702_s4 + $0x4] sm:$0xf]  ;;  %v521_v29 = vld [vmem:[%s698_s0 + $0x30] sm:$0xff]   ;;  %337 = vrot.lane.b32.xlu0 %v285_v25, %s558_s9  ;;  %vm196_vm2 = vcmask 359424  }
  0x16   :  { %v523_v30 = vld [vmem:[%s698_s0 + $0x78] sm:$0xff]   ;;  %362 = vrot.lane.b32.xlu1 %v287_v28, %s558_s9  ;;  %v288_v34 = vld [vmem:[%s702_s4 + $0x8] sm:$0xf]  ;;  %vm293_vm3 = vcmask 289792   ;;  %vm297_vm4 = vcmask 1043456   ;;  %vm327_vm5 = vcmask 7168  }
  0x17   :  { %476 = vmatpush3.bf16.msra.mxu0 %v518_v15  ;;  %v71_v31 = vsub.s32 %v68_v27, %v70_v23  ;;  %v524_v35 = vld [vmem:[%s698_s0 + $0x38] sm:$0xff]   ;;  %s559_s0 = smov 92   ;;  %vm329_vm6 = vcmask 15360   ;;  %vm404_vm7 = vcmask 1040384   ;;  %s560_s22 = smov [#allocation2]   ;;  %vm428_vm9 = vcmask 17408  }
  0x18   :  { %477 = vmatprep.subr.bf16.mxu0 %v520_v19  ;;  %s436_s23 = sshll.u32 %s560_s22, 4  ;;  %s437_s23 = int_to_ptr.vmem [resolvable:$true] %s436_s23 }
  0x19   :  { %v72_v32 = vrot.slane %v25_v17, %v71_v31  ;;  %v79_v33 = vrot.slane %v65_v26, %v71_v31  ;;  %381 = vrot.lane.b32.xlu0 %v288_v34, %s558_s9  ;;  %p536_p1 = scmp.lt.s32.totalorder %s437_s23, %s437_s23 }
  0x1b   :  { %478 = vmatpush3.bf16.msra.mxu0 %v521_v29  ;;  %v80_v36 = vcombine.high %v72_v32, %v72_v32  ;;  %498 = vmatmul.mubr.msk.bf16.vlgmr.msra.gmra.mrb[0].mxu1 %vm196_vm2, %v79_v33 }
  0x1c   :  { %479 = vmatprep.subr.bf16.mxu0 %v523_v30 }
  0x1d   :  { %236 = vmatprep.mubr.bf16.mxu0 %v80_v36 }
  0x1f   :  { %480 = vmatpush3.bf16.msra.mxu0 %v524_v35 }
  0x22   :  { %237 = vmatmul.mubr.bf16.vlgmr.msra.gmra.mrb[0].mxu0 %v72_v32 }
  0x7a   :  { %v333_v41 = vpop.permute.xlu0 %332 }
  0x7b   :  { %v344_v47 = vpop.permute.xlu1 %343 }
  0x87   :  { %v338_v49 = vpop.permute.xlu0 %337 }
  0x88   :  { %v363_v52 = vpop.permute.xlu1 %362 }
  0x8b   :  { %v382_v56 = vpop.permute.xlu0 %381 }
  0xee   :  { %v278_v37 = vpop.f32.mrb[0].mxu1 }
  0xef   :  { %v499_v38 = vpop.f32.mrb[1].mxu1 }
  0xf0   :  { %v281_v39 = vpop.f32.mrb[2].mxu1 }
  0xf1   :  { %v500_v40 = vpop.f32.mrb[3].mxu1 }
  0xf5   :  { %v481_v42 = vpop.f32.mrb[0].mxu0 }
  0xf6   :  { %v482_v43 = vpop.f32.mrb[1].mxu0 }
  0xf7   :  { %v483_v44 = vadd.f32 %v482_v43, %v481_v42  ;;  %v484_v45 = vpop.f32.mrb[2].mxu0 }
  0xf8   :  { %v485_v46 = vpop.f32.mrb[3].mxu0 }
  0xf9   :  { %v279_v48 = vadd.f32 %v483_v44, %v278_v37 }
  0xfb   :  { %v335_v50 = vmul.f32 %v333_v41, %v279_v48  ;;  %v289_v58 = vmul.f32 %v284_v18, %v279_v48 }
  0xfd   :  { %v340_v51 = vadd.f32 %v338_v49, %v335_v50  ;;  %v290_v59 = vadd.f32 %v289_v58, %v285_v25 }
  0xff   :  { %v341_v53 = vmax.f32 %v340_v51, 0.0  ;;  %v291_v60 = vmax.f32 %v290_v59, 0.0 }
 0x101   :  { %v365_v54 = vmul.f32 %v363_v52, %v341_v53  ;;  %v346_v55 = vmul.f32 %v344_v47, %v341_v53  ;;  %v384_v57 = vmul.f32 %v382_v56, %v341_v53  ;;  %v292_v61 = vmul.f32 %v291_v60, %v286_v24 }
 0x102   :  { %v305_v3 = vmul.f32 %v291_v60, %v287_v28  ;;  %v316_v7 = vmul.f32 %v291_v60, %v288_v34 }
 0x103   :  { %367 = vrot.lane.b32.xlu0 %v365_v54, %s559_s0  ;;  %348 = vrot.lane.b32.xlu1 %v346_v55, %s559_s0  ;;  %v294_v62 = vsel %vm293_vm3, %v292_v61, 0.0  ;;  %v464_v61 = vld [vmem:[%s703_s5] ss:$0 sm:$0xff]  ;;  %s531_s5 = scalar_lea.vmem %s437_s23, 32 }
 0x104   :  { %v306_v5 = vsel %vm293_vm3, %v305_v3, 0.0  ;;  %v317_v8 = vsel %vm293_vm3, %v316_v7, 0.0  ;;  %p532_p0 = scmp.ne.s32.totalorder %s437_s23, %s531_s5  ;;  %p537_p2 = scmp.lt.s32.totalorder %s531_s5, %s531_s5 }
 0x106   :  { %p538_p3 = por %p537_p2, %p536_p1 }
 0x107   :  { %386 = vrot.lane.b32.xlu1 %v384_v57, %s559_s0 }
 0x108   :  { %p539_p4 = pnand %p538_p3, %p532_p0 }
 0x122   :  { %295 = vadd.xlane.f32.xlu0 %v294_v62 }
 0x175   :  { %v368_v63 = vpop.permute.xlu0 %367  ;;  %v349_v0 = vpop.permute.xlu1 %348 }
 0x176   :  { %v370_v1 = vsel %vm293_vm3, %v368_v63, 0.0  ;;  %v351_v2 = vsel %vm293_vm3, %v349_v0, 0.0 }
 0x177   :  { %371 = vadd.xlane.f32.xlu1 %v370_v1  ;;  %352 = vadd.xlane.f32.xlu0 %v351_v2 }
 0x179   :  { %v387_v4 = vpop.permute.xlu1 %386 }
 0x17a   :  { %v389_v6 = vsel %vm293_vm3, %v387_v4, 0.0 }
 0x17b   :  { %307 = vadd.xlane.f32.xlu1 %v306_v5  ;;  %390 = vadd.xlane.f32.xlu0 %v389_v6 }
 0x17f   :  { %318 = vadd.xlane.f32.xlu0 %v317_v8 }
 0x1af   :  { %v296_v9 = vpop.xlane.xlu0 %295 }
 0x1b0   :  { %v298_v10 = vsel %vm297_vm4, %v296_v9, 0.0 }
 0x1b1   :  { %v299_v11 = vrot.slane %v298_v10, 4 }
 0x1b3   :  { %v300_v18 = vadd.f32 %v299_v11, %v298_v10 }
 0x1b5   :  { %v301_v29 = vrot.slane %v300_v18, 2 }
 0x1b7   :  { %v302_v41 = vadd.f32 %v301_v29, %v300_v18 }
 0x1b9   :  { %v303_v50 = vrot.slane %v302_v41, 1 }
 0x1bb   :  { %v304_v57 = vadd.f32 %v303_v50, %v302_v41 }
 0x204   :  { %v372_v12 = vpop.xlane.xlu1 %371  ;;  %v353_v13 = vpop.xlane.xlu0 %352 }
 0x205   :  { %v373_v14 = vsel %vm297_vm4, %v372_v12, 0.0  ;;  %v354_v15 = vsel %vm297_vm4, %v353_v13, 0.0 }
 0x206   :  { %v374_v16 = vrot.slane %v373_v14, 4  ;;  %v355_v17 = vrot.slane %v354_v15, 4 }
 0x208   :  { %v375_v19 = vadd.f32 %v374_v16, %v373_v14  ;;  %v356_v20 = vadd.f32 %v355_v17, %v354_v15  ;;  %v308_v21 = vpop.xlane.xlu1 %307  ;;  %v391_v22 = vpop.xlane.xlu0 %390 }
 0x209   :  { %v309_v23 = vsel %vm297_vm4, %v308_v21, 0.0  ;;  %v392_v24 = vsel %vm297_vm4, %v391_v22, 0.0 }
 0x20a   :  { %v376_v25 = vrot.slane %v375_v19, 2  ;;  %v357_v26 = vrot.slane %v356_v20, 2  ;;  %v310_v27 = vrot.slane %v309_v23, 4  ;;  %v393_v28 = vrot.slane %v392_v24, 4 }
 0x20c   :  { %v377_v30 = vadd.f32 %v376_v25, %v375_v19  ;;  %v358_v31 = vadd.f32 %v357_v26, %v356_v20  ;;  %v311_v32 = vadd.f32 %v310_v27, %v309_v23  ;;  %v394_v33 = vadd.f32 %v393_v28, %v392_v24  ;;  %v319_v34 = vpop.xlane.xlu0 %318 }
 0x20d   :  { %v320_v35 = vsel %vm297_vm4, %v319_v34, 0.0 }
 0x20e   :  { %v378_v36 = vrot.slane %v377_v30, 1  ;;  %v359_v37 = vrot.slane %v358_v31, 1  ;;  %v312_v38 = vrot.slane %v311_v32, 2  ;;  %v395_v39 = vrot.slane %v394_v33, 2 }
 0x20f   :  { %v321_v40 = vrot.slane %v320_v35, 4 }
 0x210   :  { %v313_v42 = vadd.f32 %v312_v38, %v311_v32  ;;  %v396_v43 = vadd.f32 %v395_v39, %v394_v33  ;;  %v379_v45 = vadd.f32 %v378_v36, %v377_v30  ;;  %v360_v46 = vadd.f32 %v359_v37, %v358_v31 }
 0x211   :  { %v322_v44 = vadd.f32 %v321_v40, %v320_v35 }
 0x212   :  { %v314_v47 = vrot.slane %v313_v42, 1  ;;  %v397_v48 = vrot.slane %v396_v43, 1  ;;  %v399_v53 = vsel %vm327_vm5, %v360_v46, %v379_v45 }
 0x213   :  { %v323_v49 = vrot.slane %v322_v44, 2 }
 0x214   :  { %v398_v51 = vadd.f32 %v397_v48, %v396_v43  ;;  %v315_v54 = vadd.f32 %v314_v47, %v313_v42 }
 0x215   :  { %v324_v52 = vadd.f32 %v323_v49, %v322_v44 }
 0x216   :  { %v400_v55 = vsel %vm329_vm6, %v399_v53, %v398_v51  ;;  %v328_v59 = vsel %vm327_vm5, %v304_v57, %v315_v54 }
 0x217   :  { %v325_v56 = vrot.slane %v324_v52, 1  ;;  %v402_v60 = vrot.slane %v400_v55, 7 }
 0x219   :  { %v326_v58 = vadd.f32 %v325_v56, %v324_v52 }
 0x21b   :  { %v330_v62 = vsel %vm329_vm6, %v328_v59, %v326_v58 }
 0x21c   :  { %v405_v63 = vsel %vm404_vm7, %v330_v62, %v402_v60 }
 0x21d   :  { %v413_v0 = vadd.f32 %v464_v61, %v405_v63 }
 0x21f   :  { %v415_v1 = vmin.f32 %v413_v0, 20.0  ;;  %vm414_vm10 = vcmp.gt.f32.partialorder %v413_v0, 20.0 }
 0x221   :  { %v416_v2 = vmul.f32 1.442695, %v415_v1 }
 0x223   :  { %527 = vpow2.f32 %v416_v2 }
 0x22d   :  { %v528_v3 = vpop.eup %527 }
 0x22e   :  { %v418_v4 = vadd.f32 1.0, %v528_v3  ;;  %v421_v5 = vmul.f32 -0.5, %v528_v3  ;;  %v424_v7 = vand.u32 2147483647, %v528_v3 }
 0x230   :  { %529 = vlog2.f32 %v418_v4  ;;  %v422_v6 = vadd.f32 1.0, %v421_v5  ;;  %vm425_vm8 = vcmp.lt.f32.partialorder %v424_v7, 0.0004427343 }
 0x232   :  { %v423_v10 = vmul.f32 %v528_v3, %v422_v6 }
 0x23a   :  { %v530_v8 = vpop.eup %529 }
 0x23b   :  { %v420_v9 = vmul.f32 0.6931472, %v530_v8 }
 0x23d   :  { %v426_v11 = vsel %vm425_vm8, %v423_v10, %v420_v9 }
 0x23e   :  { %v427_v12 = vsel %vm414_vm10, %v413_v0, %v426_v11 }
 0x23f   :  { %429 = vst.msk [vmem:[#allocation2] sm:$0x3] %vm428_vm9, %v427_v12 }
 0x240   :  { %542 = shalt.err (!%p539_p4)
}
 0x241   :  { %s543_s26 = scalar_lea.hbm %s704_s6, 32 }
 0x242   :  { %p544_p5 = scmp.ne.s32.totalorder %s704_s6, %s543_s26  ;;  %p547_p6 = scmp.lt.u32.totalorder %s543_s26, %s704_s6 }
 0x244   :  { %p549_p7 = pnand %p547_p6, %p544_p5 }
 0x246   :  { %552 = shalt.err (!%p549_p7)
}
 0x247   :  { %439 = dma.vmem_to_hbm [thread:$0]  %s437_s23, 32, %s704_s6, [#allocation3]  }
 0x248   :  { %553 = dma.done.wait [#allocation3], 32  }
 0x249   :  { %554 = vsyncadd [#allocation3], 4294967264 }
 0x24a   :  { %443 = vsyncpa [#allocation3], 1 }

</bundles_post_ra>
